<compile_context>
chip_gen: v6e
topology: v6e:2x2x1
jax: 0.10.0
libtpu: 0.0.40
codegen_flags: <defaults>
</compile_context>

<pallas_src>
import functools

import jax
import jax.numpy as jnp
from jax import lax
from jax.experimental import pallas as pl
from jax.experimental.pallas import tpu as pltpu


COMPUTE_DTYPE = jnp.bfloat16          # MXU-friendly operand dtype (f32 accumulation)
VMEM_LIMIT = 32 * 1024 * 1024         # >= default scoped limit on v5e/v6e/v7x, safe everywhere
# Tile sizes: multiples of 256 fill the v6e/v7x 2x256^2 MXU; also 128-aligned for v5e.
DEFAULT_TM = 256
DEFAULT_TN = 256


def _compiler_params(semantics):
    return pltpu.CompilerParams(dimension_semantics=semantics,
                                vmem_limit_bytes=VMEM_LIMIT)


# --------------------------------------------------------------------------------------
# Fused (LayerNorm?) + matmul + bias + (GELU?) + (residual?) + (scale?) kernel
# --------------------------------------------------------------------------------------

def _linear_kernel(*refs, fuse_ln, eps, activation, fuse_residual, out_scale):
    idx = 0
    x_ref = refs[idx]; idx += 1          # (tm, K)
    w_ref = refs[idx]; idx += 1          # (K, tn)
    b_ref = refs[idx]; idx += 1          # (1, tn)
    if fuse_ln:
        g_ref = refs[idx]; idx += 1      # (1, K)
        be_ref = refs[idx]; idx += 1     # (1, K)
    if fuse_residual:
        r_ref = refs[idx]; idx += 1      # (tm, tn)
    o_ref = refs[idx]                    # (tm, tn)

    x = x_ref[...]
    if fuse_ln:
        xf = x.astype(jnp.float32)
        mu = jnp.mean(xf, axis=-1, keepdims=True)
        var = jnp.mean(jnp.square(xf - mu), axis=-1, keepdims=True)
        xf = (xf - mu) * lax.rsqrt(var + eps)
        xf = xf * g_ref[...].astype(jnp.float32) + be_ref[...].astype(jnp.float32)
        x = xf.astype(x_ref.dtype)       # feed bf16 to the MXU

    y = jnp.dot(x, w_ref[...], preferred_element_type=jnp.float32)
    y = y + b_ref[...].astype(jnp.float32)

    if activation == "gelu":
        # exact (erf-based) GELU, matching torch.nn.GELU default
        y = 0.5 * y * (1.0 + lax.erf(y * 0.7071067811865476))
    if fuse_residual:
        y = y + r_ref[...].astype(jnp.float32)
    if out_scale is not None:
        y = y * out_scale

    o_ref[...] = y.astype(o_ref.dtype)


def linear(x, w, b, *, ln=None, activation=None, residual=None, out_scale=None,
           out_dtype=None, tm=DEFAULT_TM, tn=DEFAULT_TN):
    """y = [LN(x)] @ w + b [+GELU] [+residual] [*out_scale], tiled Pallas matmul.

    x: [..., K]; w: [K, N]; b: [N]; ln: (gamma, beta) fused pre-LN over K;
    residual: array broadcastable to [..., N] added in the epilogue.
    """
    lead = x.shape[:-1]
    K = x.shape[-1]
    N = w.shape[-1]
    x2 = x.reshape(-1, K)
    M = x2.shape[0]
    out_dtype = out_dtype or x.dtype

    tm = M if M <= tm else tm            # full-extent block when smaller than the tile
    tn = N if N <= tn else tn
    grid = (pl.cdiv(M, tm), pl.cdiv(N, tn))

    in_specs = [
        pl.BlockSpec((tm, K), lambda i, j: (i, 0)),
        pl.BlockSpec((K, tn), lambda i, j: (0, j)),
        pl.BlockSpec((1, tn), lambda i, j: (0, j)),
    ]
    args = [x2, w, b.reshape(1, N)]
    if ln is not None:
        gamma, beta = ln
        in_specs += [pl.BlockSpec((1, K), lambda i, j: (0, 0)),
                     pl.BlockSpec((1, K), lambda i, j: (0, 0))]
        args += [gamma.reshape(1, K), beta.reshape(1, K)]
    if residual is not None:
        in_specs.append(pl.BlockSpec((tm, tn), lambda i, j: (i, j)))
        args.append(residual.reshape(M, N))

    out = pl.pallas_call(
        functools.partial(_linear_kernel, fuse_ln=ln is not None, eps=1e-5,
                          activation=activation, fuse_residual=residual is not None,
                          out_scale=out_scale),
        out_shape=jax.ShapeDtypeStruct((M, N), out_dtype),
        grid=grid,
        in_specs=in_specs,
        out_specs=pl.BlockSpec((tm, tn), lambda i, j: (i, j)),
        compiler_params=_compiler_params(("parallel", "parallel")),
    )(*args)
    return out.reshape(*lead, N)


# --------------------------------------------------------------------------------------
# Multi-head self-attention kernel: one batch element (all heads) per grid step.
# Reads the raw [B, N, 3E] QKV tensor (layout (3, H, Dh) along the last dim, matching the
# torch reshape(B,N,3,H,Dh).permute(...)), writes a head-concatenated [B, N, E] output.
# --------------------------------------------------------------------------------------

def _attention_kernel(qkv_ref, o_ref, *, num_heads, head_dim, scale):
    E = num_heads * head_dim
    qkv = qkv_ref[0]                                    # (N, 3E)
    outs = []
    for h in range(num_heads):                          # unrolled; num_heads is small
        lo = h * head_dim
        q = qkv[:, lo:lo + head_dim]                    # (N, Dh)  bf16
        k = qkv[:, E + lo:E + lo + head_dim]            # (N, Dh)
        v = qkv[:, 2 * E + lo:2 * E + lo + head_dim]    # (N, Dh)
        s = jnp.dot(q, k.T, preferred_element_type=jnp.float32) * scale   # (N, N) f32
        s = s - jnp.max(s, axis=-1, keepdims=True)
        p = jnp.exp(s)
        p = p * pl.reciprocal(jnp.sum(p, axis=-1, keepdims=True), approx=True)
        outs.append(jnp.dot(p.astype(v.dtype), v, preferred_element_type=jnp.float32))
    # one lane-dense (N, E) store instead of per-head masked partial stores
    o_ref[0] = jnp.concatenate(outs, axis=-1).astype(o_ref.dtype)


def attention(qkv, *, num_heads, scale, out_dtype):
    """qkv: [B, N, 3E] -> attention output [B, N, E] (heads concatenated)."""
    B, N, threeE = qkv.shape
    E = threeE // 3
    head_dim = E // num_heads
    return pl.pallas_call(
        functools.partial(_attention_kernel, num_heads=num_heads, head_dim=head_dim,
                          scale=scale),
        out_shape=jax.ShapeDtypeStruct((B, N, E), out_dtype),
        grid=(B,),
        in_specs=[pl.BlockSpec((1, N, threeE), lambda b: (b, 0, 0))],
        out_specs=pl.BlockSpec((1, N, E), lambda b: (b, 0, 0)),
        compiler_params=_compiler_params(("parallel",)),
    )(qkv)


# --------------------------------------------------------------------------------------
# Parameter initialization (synthetic, deterministic)
# --------------------------------------------------------------------------------------

def init_params(key, *, in_channels, image_size, patch_size, embed_dim,
                num_encoders, num_heads, mlp_ratio, num_classes,
                dtype=COMPUTE_DTYPE):
    num_patches = (image_size // patch_size) ** 2
    hidden = int(embed_dim * mlp_ratio)
    keys = iter(jax.random.split(key, 8 + 8 * num_encoders))

    def w(shape, scale=0.02):
        return (jax.random.normal(next(keys), shape, jnp.float32) * scale).astype(dtype)

    params = {
        "patch_size": patch_size,
        "num_heads": num_heads,
        "embed_dim": embed_dim,
        # conv-as-matmul weight: [C*P*P, E] (flattening order (c, ph, pw) matches NCHW conv)
        "patch_w": w((in_channels * patch_size * patch_size, embed_dim)),
        "patch_b": jnp.zeros((embed_dim,), jnp.float32),
        "cls_token": w((1, 1, embed_dim)),
        "distill_token": w((1, 1, embed_dim)),
        "pos_embed": w((1, num_patches + 2, embed_dim)),
        "head_w": w((embed_dim, num_classes)),
        "head_b": jnp.zeros((num_classes,), jnp.float32),
        "head_distill_w": w((embed_dim, num_classes)),
        "head_distill_b": jnp.zeros((num_classes,), jnp.float32),
        "encoders": [],
    }
    for _ in range(num_encoders):
        enc = {
            "ln1_g": jnp.ones((embed_dim,), jnp.float32),
            "ln1_b": jnp.zeros((embed_dim,), jnp.float32),
            "qkv_w": w((embed_dim, 3 * embed_dim)),            # qkv_bias=True
            "qkv_b": jnp.zeros((3 * embed_dim,), jnp.float32),
            "proj_w": w((embed_dim, embed_dim)),
            "proj_b": jnp.zeros((embed_dim,), jnp.float32),
            "ln2_g": jnp.ones((embed_dim,), jnp.float32),
            "ln2_b": jnp.zeros((embed_dim,), jnp.float32),
            "fc1_w": w((embed_dim, hidden)),
            "fc1_b": jnp.zeros((hidden,), jnp.float32),
            "fc2_w": w((hidden, embed_dim)),
            "fc2_b": jnp.zeros((embed_dim,), jnp.float32),
        }
        params["encoders"].append(enc)
    return params


# --------------------------------------------------------------------------------------
# DeiT forward
# --------------------------------------------------------------------------------------

def deit_forward(params, x, training=False):
    """x: [B, C, H, W] (NCHW, like the PyTorch module)."""
    B, C, H, W = x.shape
    P = params["patch_size"]
    E = params["embed_dim"]
    num_heads = params["num_heads"]
    head_dim = E // num_heads
    scale = head_dim ** -0.5                      # qk_scale=None -> head_dim**-0.5

    # --- PatchEmbedding: conv(k=P, s=P) == im2col + matmul --------------------------
    nh, nw = H // P, W // P
    patches = (x.astype(COMPUTE_DTYPE)
                 .reshape(B, C, nh, P, nw, P)
                 .transpose(0, 2, 4, 1, 3, 5)
                 .reshape(B, nh * nw, C * P * P))
    tok = linear(patches, params["patch_w"], params["patch_b"])        # [B, N_p, E] bf16

    cls = jnp.broadcast_to(params["cls_token"], (B, 1, E))
    dist = jnp.broadcast_to(params["distill_token"], (B, 1, E))
    h = jnp.concatenate([cls, dist, tok], axis=1) + params["pos_embed"]  # [B, N, E]
    # dropout p=0.0 -> identity

    # --- Transformer encoders (pre-norm) --------------------------------------------
    for enc in params["encoders"]:
        # MHSA block: LN fused into QKV matmul; residual fused into proj matmul.
        qkv = linear(h, enc["qkv_w"], enc["qkv_b"],
                     ln=(enc["ln1_g"], enc["ln1_b"]))                   # [B, N, 3E]
        att = attention(qkv, num_heads=num_heads, scale=scale,
                        out_dtype=COMPUTE_DTYPE)                        # [B, N, E]
        h = linear(att, enc["proj_w"], enc["proj_b"], residual=h)       # h + proj(att)
        # MLP block: LN + fc1 + exact GELU fused; residual fused into fc2.
        u = linear(h, enc["fc1_w"], enc["fc1_b"],
                   ln=(enc["ln2_g"], enc["ln2_b"]), activation="gelu")  # [B, N, 4E]
        h = linear(u, enc["fc2_w"], enc["fc2_b"], residual=h)           # h + fc2(u)

    # --- Heads -----------------------------------------------------------------------
    if training:
        x_cls = linear(h[:, 0], params["head_w"], params["head_b"], out_dtype=jnp.float32)
        x_distill = linear(h[:, 1], params["head_distill_w"], params["head_distill_b"],
                           out_dtype=jnp.float32)
        return {"logit": x_cls, "distill": x_distill}

    # eval: (head(cls) + head_distill(dist)) / 2 == one fused matmul over [cls|dist]
    cls_dist = h[:, 0:2].reshape(B, 2 * E)                              # [B, 2E]
    w_comb = jnp.concatenate([params["head_w"], params["head_distill_w"]], axis=0)
    b_comb = params["head_b"] + params["head_distill_b"]
    logit = linear(cls_dist, w_comb, b_comb, out_scale=0.5, out_dtype=jnp.float32)
    return {"logit": logit}


# --------------------------------------------------------------------------------------
# Demo
# --------------------------------------------------------------------------------------

if __name__ == "__main__":
    key = jax.random.PRNGKey(0)
    k_params, k_x = jax.random.split(key)

    # small DeiT config: 16x16 image, 4x4 patches -> 16 patches + cls + distill = 18 tokens
    cfg = dict(in_channels=3, image_size=16, patch_size=4, embed_dim=32,
               num_encoders=2, num_heads=4, mlp_ratio=4.0, num_classes=16)
    params = init_params(k_params, **cfg)

    x = jax.random.normal(k_x, (2, cfg["in_channels"], cfg["image_size"], cfg["image_size"]),
                          dtype=jnp.float32)

    out = deit_forward(params, x, training=False)
    jax.block_until_ready(out)
    assert out["logit"].shape == (2, cfg["num_classes"])
    assert out["logit"].dtype == jnp.float32
    print("KERNEL_OK")
</pallas_src>

<mosaic_0001>
module attributes {stable_mosaic.version = 11 : i64} {
  func.func @_linear_kernel(%arg0: i32, %arg1: i32, %arg2: memref<32x48xbf16, #tpu.memory_space<vmem>>, %arg3: memref<48x32xbf16, #tpu.memory_space<vmem>>, %arg4: memref<1x32xf32, #tpu.memory_space<vmem>>, %arg5: memref<32x32xbf16, #tpu.memory_space<vmem>>) attributes {dimension_semantics = [#tpu.dimension_semantics<parallel>, #tpu.dimension_semantics<parallel>], iteration_bounds = array<i64: 1, 1>, scalar_prefetch = 0 : i64, scratch_operands = 0 : i64, tpu.core_type = #tpu.core_type<tc>, window_params = [{transform_indices = @transform_0, window_bounds = array<i64: 32, 48>}, {transform_indices = @transform_1, window_bounds = array<i64: 48, 32>}, {transform_indices = @transform_2, window_bounds = array<i64: 1, 32>}, {transform_indices = @transform_3, window_bounds = array<i64: 32, 32>}]} {
    %c0 = arith.constant 0 : index
    %c0_0 = arith.constant 0 : index
    %0 = vector.load %arg2[%c0, %c0_0] : memref<32x48xbf16, #tpu.memory_space<vmem>>, vector<32x48xbf16>
    %c0_1 = arith.constant 0 : index
    %c0_2 = arith.constant 0 : index
    %1 = vector.load %arg3[%c0_1, %c0_2] : memref<48x32xbf16, #tpu.memory_space<vmem>>, vector<48x32xbf16>
    %cst = arith.constant dense<0.000000e+00> : vector<32x32xf32>
    %2 = tpu.matmul %0, %1, %cst {dimension_numbers = #tpu.dot_dimension_numbers<[1], [0], [0], [1], [0, 0, 1, 1], [], []>} : vector<32x48xbf16>, vector<48x32xbf16>, vector<32x32xf32> -> vector<32x32xf32>
    %c0_3 = arith.constant 0 : index
    %c0_4 = arith.constant 0 : index
    %3 = vector.load %arg4[%c0_3, %c0_4] : memref<1x32xf32, #tpu.memory_space<vmem>>, vector<1x32xf32>
    %4 = vector.broadcast %3 : vector<1x32xf32> to vector<32x32xf32>
    %5 = arith.addf %2, %4 : vector<32x32xf32>
    %6 = arith.truncf %5 : vector<32x32xf32> to vector<32x32xbf16>
    %c0_5 = arith.constant 0 : index
    %c0_6 = arith.constant 0 : index
    %7 = vector.load %arg5[%c0_5, %c0_6] : memref<32x32xbf16, #tpu.memory_space<vmem>>, vector<32x32xbf16>
    tpu.vector_store %arg5[%c0_5, %c0_6], %6 {strides = array<i32>} : memref<32x32xbf16, #tpu.memory_space<vmem>>, vector<32x32xbf16>,
    return
  }
  func.func @transform_0(%arg0: i32, %arg1: i32) -> (i32, i32) {
    %c0_i32 = arith.constant 0 : i32
    %c0_i32_0 = arith.constant 0 : i32
    return %arg0, %c0_i32 : i32, i32
  }
  func.func @transform_1(%arg0: i32, %arg1: i32) -> (i32, i32) {
    %c0_i32 = arith.constant 0 : i32
    %c0_i32_0 = arith.constant 0 : i32
    return %c0_i32, %arg1 : i32, i32
  }
  func.func @transform_2(%arg0: i32, %arg1: i32) -> (i32, i32) {
    %c0_i32 = arith.constant 0 : i32
    %c0_i32_0 = arith.constant 0 : i32
    return %c0_i32, %arg1 : i32, i32
  }
  func.func @transform_3(%arg0: i32, %arg1: i32) -> (i32, i32) {
    %c0_i32 = arith.constant 0 : i32
    return %arg0, %arg1 : i32, i32
  }
}

</mosaic_0001>

<bundles_post_ra>
// kernel: tpu_custom_call.1
= control target key start
LH: loop header
LB: loop body
LE: loop exit
PB: predicated region body
PF: predicated region fallthrough
CT: control target
= control target key end

     0   :  { %vm61_vm0 = vcmask 392192   ;;  %s263_s0 = inlined_call_operand.vmem [shape: bf16[32,48], index: 0, kind: input, shape index: {}]   ;;  %s264_s1 = inlined_call_operand.vmem [shape: bf16[48,32], index: 1, kind: input, shape index: {}]   ;;  %s265_s2 = inlined_call_operand.vmem [shape: f32[1,32], index: 2, kind: input, shape index: {}]   ;;  %s266_s3 = inlined_call_operand.hbm [shape: bf16[32,32], index: 3, kind: output, shape index: {}]  }
   0x1   :  { %v188_v0 = vld [vmem:[%s264_s1 + $0x10] sm:$0xff]   ;;  %v189_v1 = vld [vmem:[%s264_s1 + $0x8] sm:$0xff]   ;;  %v191_v2 = vld [vmem:[%s263_s0] sm:$0xff]  }
   0x2   :  { %175 = vmatprep.subr.bf16.mxu0 %v188_v0  ;;  %v190_v3 = vld [vmem:[%s264_s1] sm:$0xff]   ;;  %181 = vmatprep.mubr.msk.bf16.mxu0 %vm61_vm0, %v191_v2 }
   0x3   :  { %176 = vmatpush3.bf16.msra.mxu0 %v188_v0 }
   0x4   :  { %177 = vmatprep.subr.bf16.mxu0 %v189_v1 }
   0x5   :  { %8 = vsyncpa [#allocation3], 0  ;;  %v192_v4 = vld [vmem:[%s263_s0 + $0x8] sm:$0xff]   ;;  %v154_v5 = vld [vmem:[%s265_s2] ss:$0 sm:$0xff]  ;;  %vm133_vm1 = vcmask 257024  }
   0x6   :  { %s215_s1 = smov [#allocation2]  }
   0x7   :  { %178 = vmatpush3.bf16.msra.mxu0 %v189_v1  ;;  %s143_s24 = sshll.u32 %s215_s1, 4  ;;  %s144_s24 = int_to_ptr.vmem [resolvable:$true] %s143_s24 }
   0x8   :  { %179 = vmatprep.subr.bf16.mxu0 %v190_v3  ;;  %s193_s0 = scalar_lea.vmem %s144_s24, 256  ;;  %p198_p1 = scmp.lt.s32.totalorder %s144_s24, %s144_s24 }
   0x9   :  { %p194_p0 = scmp.ne.s32.totalorder %s144_s24, %s193_s0  ;;  %p199_p2 = scmp.lt.s32.totalorder %s193_s0, %s193_s0 }
   0xb   :  { %180 = vmatpush3.bf16.msra.mxu0 %v190_v3  ;;  %p200_p3 = por %p199_p2, %p198_p1 }
   0xd   :  { %p201_p4 = pnand %p200_p3, %p194_p0 }
   0xe   :  { %182 = vmatmul.mubr.msk.bf16.vlgmr.msra.gmra.mxu0 %vm61_vm0, %v192_v4 }
  0xce   :  { %v183_v6 = vpop.f32.mrf.mxu0 }
  0xcf   :  { %v111_v7 = vadd.f32 %v183_v6, %v154_v5 }
  0xd0   :  { %v102_v8 = vpop.f32.mrf.mxu0 }
  0xd1   :  { %v168_v9 = vpack.c.bf16 %v111_v7, %v111_v7  ;;  %v103_v10 = vadd.f32 %v154_v5, %v102_v8 }
  0xd2   :  { %v184_v11 = vpop.f32.mrf.mxu0 }
  0xd3   :  { %136 = vst.msk [vmem:[#allocation2 + $0x8] sm:$0xf] %vm133_vm1, %v168_v9  ;;  %v166_v12 = vpack.c.bf16 %v103_v10, %v103_v10  ;;  %v114_v13 = vadd.f32 %v184_v11, %v154_v5 }
  0xd4   :  { %v105_v14 = vpop.f32.mrf.mxu0 }
  0xd5   :  { %134 = vst.msk [vmem:[#allocation2] sm:$0xf] %vm133_vm1, %v166_v12  ;;  %v169_v15 = vpack.c.bf16 %v114_v13, %v114_v13  ;;  %v106_v16 = vadd.f32 %v154_v5, %v105_v14 }
  0xd7   :  { %137 = vst.msk [vmem:[#allocation2 + $0xc] sm:$0xf] %vm133_vm1, %v169_v15  ;;  %v167_v17 = vpack.c.bf16 %v106_v16, %v106_v16 }
  0xd9   :  { %135 = vst.msk [vmem:[#allocation2 + $0x4] sm:$0xf] %vm133_vm1, %v167_v17 }
  0xda   :  { %204 = shalt.err (!%p201_p4)
}
  0xdb   :  { %s216_s2 = smov 64   ;;  %s217_s25 = smov 4  }
  0xdc   :  { %149 = dma.vmem_to_hbm [thread:$0]  %s144_s24, 256, %s266_s3, [#allocation3], %s216_s2, %s216_s2, %s217_s25  }
  0xdd   :  { %213 = dma.done.wait [#allocation3], 256  }
  0xde   :  { %214 = vsyncadd [#allocation3], 4294967040 }
  0xdf   :  { %153 = vsyncpa [#allocation3], 1 }

</bundles_post_ra>
